<compile_context>
chip_gen: v6e
topology: v6e:2x2x1
jax: 0.10.0
libtpu: 0.0.40
codegen_flags: <defaults>
</compile_context>

<pallas_src>
import functools
import math

import jax
import jax.numpy as jnp
from jax import lax
from jax.experimental import pallas as pl
from jax.experimental.pallas import tpu as pltpu


# ---------------------------------------------------------------------------
# Helpers
# ---------------------------------------------------------------------------
def _round_up(x, m):
    return ((x + m - 1) // m) * m


def _choose_tiles(seq_len, block_q, block_kv):
    """8-aligned q/kv tiles plus a padded sequence length both tiles divide."""
    cap = _round_up(seq_len, 8)
    tq = _round_up(min(block_q, cap), 8)
    tk = _round_up(min(block_kv, cap), 8)
    # Keep one tile a multiple of the other so one padded length serves both
    # grid axes without huge LCM padding.
    if tk % tq != 0 and tq % tk != 0:
        tk = tq
    s_pad = _round_up(seq_len, max(tq, tk))
    return tq, tk, s_pad


def _default_exp_dtype(compute_dtype):
    """bf16 exp only where the EUP has a bf16 path (v6e / v7x)."""
    if compute_dtype != jnp.bfloat16:
        return jnp.float32
    try:
        kind = jax.devices()[0].device_kind.lower()
    except Exception:  # pragma: no cover - defensive
        return jnp.float32
    if "v6" in kind or "v7" in kind:
        return jnp.bfloat16
    return jnp.float32  # v5e and older: no bf16 EUP, keep f32 softmax math


# ---------------------------------------------------------------------------
# Kernel 1: Q/K/V projection (run once over the sequence, hoisted out of the
# flash-attention inner loop). Q is pre-scaled by 1/sqrt(d_out).
# ---------------------------------------------------------------------------
def _qkv_proj_kernel(x_ref, wq_ref, wk_ref, wv_ref, q_ref, k_ref, v_ref, *, scale):
    x = x_ref[...]
    q = jnp.dot(x, wq_ref[...], preferred_element_type=jnp.float32)
    q_ref[...] = (q * scale).astype(q_ref.dtype)
    k_ref[...] = jnp.dot(x, wk_ref[...],
                         preferred_element_type=jnp.float32).astype(k_ref.dtype)
    v_ref[...] = jnp.dot(x, wv_ref[...],
                         preferred_element_type=jnp.float32).astype(v_ref.dtype)


# ---------------------------------------------------------------------------
# Kernel 2: flash attention over pre-projected, pre-scaled Q and K/V.
# ---------------------------------------------------------------------------
def _flash_attn_kernel(q_ref, k_ref, v_ref, o_ref, m_scr, l_scr, acc_scr, *,
                       seq_len, block_kv, compute_dtype, exp_dtype, mask_tail):
    ki = pl.program_id(1)

    @pl.when(ki == 0)
    def _init():
        # Finite "very negative" init (not -inf) keeps alpha = exp(m_prev - m_new)
        # well defined even if a kv tile is fully masked padding.
        m_scr[...] = jnp.full_like(m_scr, jnp.finfo(jnp.float32).min)
        l_scr[...] = jnp.zeros_like(l_scr)
        acc_scr[...] = jnp.zeros_like(acc_scr)

    # scores = Q @ K^T without an explicit transpose: contract the last dims.
    s = lax.dot_general(q_ref[...], k_ref[...],
                        dimension_numbers=(((1,), (1,)), ((), ())),
                        preferred_element_type=jnp.float32)      # (TQ, TK) f32

    if mask_tail:
        # Mask padded key rows (beyond the true sequence length) to -inf.
        col = lax.broadcasted_iota(jnp.int32, s.shape, 1)
        s = jnp.where(col < (seq_len - ki * block_kv), s, -jnp.inf)

    # Online (streaming) softmax update; max / alpha / l kept in f32.
    m_prev = m_scr[...]
    m_new = jnp.maximum(m_prev, jnp.max(s, axis=-1, keepdims=True))
    alpha = jnp.exp(m_prev - m_new)
    if exp_dtype == jnp.bfloat16:
        # bf16 EUP path (v6e/v7x): p is cast to bf16 for the PV matmul anyway.
        p = jnp.exp((s - m_new).astype(jnp.bfloat16))
    else:
        p = jnp.exp(s - m_new)
    l_scr[...] = alpha * l_scr[...] + jnp.sum(p.astype(jnp.float32),
                                              axis=-1, keepdims=True)
    acc_scr[...] = alpha * acc_scr[...] + jnp.dot(
        p.astype(compute_dtype), v_ref[...], preferred_element_type=jnp.float32)
    m_scr[...] = m_new

    @pl.when(ki == pl.num_programs(1) - 1)
    def _finalize():
        inv_l = pl.reciprocal(l_scr[...], approx=True)
        o_ref[...] = (acc_scr[...] * inv_l).astype(o_ref.dtype)


# ---------------------------------------------------------------------------
# Wrapper
# ---------------------------------------------------------------------------
def self_attention_v1(x, w_query, w_key, w_value, *,
                      block_q=256, block_kv=512,
                      compute_dtype=jnp.bfloat16, exp_dtype=None):
    """x: (seq_len, d_in); weights: (d_in, d_out)  ->  (seq_len, d_out)."""
    seq_len, d_in = x.shape
    d_out = w_query.shape[1]
    scale = 1.0 / math.sqrt(d_out)          # keys.shape[-1] ** 0.5 in the module

    if exp_dtype is None:
        exp_dtype = _default_exp_dtype(compute_dtype)

    # Lane-dense output / better MXU N-dimension: pad d_out up to a multiple of
    # 128 with zero weight columns (zero K/V columns leave the scores unchanged;
    # the extra output columns are zero and sliced off below).
    d_pad = _round_up(d_out, 128)
    if d_pad != d_out:
        pad = ((0, 0), (0, d_pad - d_out))
        wq, wk, wv = (jnp.pad(w, pad) for w in (w_query, w_key, w_value))
    else:
        wq, wk, wv = w_query, w_key, w_value

    # Tile selection + sequence padding (padded keys masked inside the kernel).
    tq, tk, s_pad = _choose_tiles(seq_len, block_q, block_kv)
    mask_tail = s_pad != seq_len
    x_p = jnp.pad(x, ((0, s_pad - seq_len), (0, 0))) if mask_tail else x

    # Pre-cast once in the wrapper (halves HBM/VMEM traffic; no per-step casts).
    x_p = x_p.astype(compute_dtype)
    wq = wq.astype(compute_dtype)
    wk = wk.astype(compute_dtype)
    wv = wv.astype(compute_dtype)

    itemsize = jnp.dtype(compute_dtype).itemsize

    # ---- Stage 1: Q/K/V projection (once over the whole sequence). ----------
    tp = max(tq, tk)                     # divides s_pad by construction
    proj_cost = pl.CostEstimate(
        flops=3 * 2 * s_pad * d_in * d_pad,
        transcendentals=0,
        bytes_accessed=(s_pad * d_in + 3 * d_in * d_pad + 3 * s_pad * d_pad) * itemsize,
    )
    q_p, k_p, v_p = pl.pallas_call(
        functools.partial(_qkv_proj_kernel, scale=scale),
        out_shape=[jax.ShapeDtypeStruct((s_pad, d_pad), compute_dtype)] * 3,
        grid_spec=pltpu.PrefetchScalarGridSpec(
            num_scalar_prefetch=0,
            grid=(s_pad // tp,),
            in_specs=[
                pl.BlockSpec((tp, d_in), lambda i: (i, 0)),      # x rows
                pl.BlockSpec((d_in, d_pad), lambda i: (0, 0)),   # W_query (resident)
                pl.BlockSpec((d_in, d_pad), lambda i: (0, 0)),   # W_key   (resident)
                pl.BlockSpec((d_in, d_pad), lambda i: (0, 0)),   # W_value (resident)
            ],
            out_specs=[pl.BlockSpec((tp, d_pad), lambda i: (i, 0))] * 3,
        ),
        compiler_params=pltpu.CompilerParams(dimension_semantics=("parallel",)),
        cost_estimate=proj_cost,
    )(x_p, wq, wk, wv)

    # ---- Stage 2: flash attention over the projected Q/K/V. -----------------
    grid = (s_pad // tq, s_pad // tk)
    attn_cost = pl.CostEstimate(
        flops=2 * 2 * s_pad * s_pad * d_pad,
        transcendentals=s_pad * s_pad,
        bytes_accessed=3 * s_pad * d_pad * itemsize + s_pad * d_pad * x.dtype.itemsize,
    )
    kernel = functools.partial(
        _flash_attn_kernel, seq_len=seq_len, block_kv=tk,
        compute_dtype=compute_dtype, exp_dtype=exp_dtype, mask_tail=mask_tail)

    out_padded = pl.pallas_call(
        kernel,
        out_shape=jax.ShapeDtypeStruct((s_pad, d_pad), x.dtype),
        grid_spec=pltpu.PrefetchScalarGridSpec(
            num_scalar_prefetch=0,
            grid=grid,
            in_specs=[
                pl.BlockSpec((tq, d_pad), lambda qi, ki: (qi, 0)),   # Q (scaled)
                pl.BlockSpec((tk, d_pad), lambda qi, ki: (ki, 0)),   # K
                pl.BlockSpec((tk, d_pad), lambda qi, ki: (ki, 0)),   # V
            ],
            out_specs=pl.BlockSpec((tq, d_pad), lambda qi, ki: (qi, 0)),
            scratch_shapes=[
                pltpu.VMEM((tq, 1), jnp.float32),       # running max   m
                pltpu.VMEM((tq, 1), jnp.float32),       # running denom l
                pltpu.VMEM((tq, d_pad), jnp.float32),   # output accumulator
            ],
        ),
        compiler_params=pltpu.CompilerParams(
            dimension_semantics=("parallel", "arbitrary"),
            vmem_limit_bytes=32 * 1024 * 1024),
        cost_estimate=attn_cost,
    )(q_p, k_p, v_p)

    if s_pad != seq_len or d_pad != d_out:
        out_padded = out_padded[:seq_len, :d_out]
    return out_padded


# ---------------------------------------------------------------------------
# Pure-JAX reference matching the PyTorch module (optionally with the kernel's
# low-precision MXU operands: f32 accumulation, f32 softmax).
# ---------------------------------------------------------------------------
def _reference(x, wq, wk, wv, compute_dtype=jnp.float32):
    cd = compute_dtype
    q = jnp.dot(x.astype(cd), wq.astype(cd), preferred_element_type=jnp.float32)
    k = jnp.dot(x.astype(cd), wk.astype(cd), preferred_element_type=jnp.float32)
    v = jnp.dot(x.astype(cd), wv.astype(cd), preferred_element_type=jnp.float32)
    scale = 1.0 / math.sqrt(wq.shape[1])
    q = (q * scale).astype(cd)
    k = k.astype(cd)
    v = v.astype(cd)
    s = lax.dot_general(q, k, dimension_numbers=(((1,), (1,)), ((), ())),
                        preferred_element_type=jnp.float32)
    w = jax.nn.softmax(s, axis=-1)
    return jnp.dot(w.astype(cd), v, preferred_element_type=jnp.float32).astype(x.dtype)


if __name__ == "__main__":
    seq_len, d_in, d_out = 128, 32, 16

    key = jax.random.PRNGKey(0)
    kx, kq, kk, kv_ = jax.random.split(key, 4)

    x = 0.5 * jax.random.normal(kx, (seq_len, d_in), dtype=jnp.float32)
    # torch.rand(d_in, d_out) ~ U[0, 1)
    w_query = jax.random.uniform(kq, (d_in, d_out), dtype=jnp.float32)
    w_key = jax.random.uniform(kk, (d_in, d_out), dtype=jnp.float32)
    w_value = jax.random.uniform(kv_, (d_in, d_out), dtype=jnp.float32)

    # 1) f32 compute path: semantic check against the exact module reference.
    out_f32 = self_attention_v1(x, w_query, w_key, w_value,
                                block_q=64, block_kv=64,
                                compute_dtype=jnp.float32)
    out_f32 = jax.block_until_ready(out_f32)
    ref_f32 = _reference(x, w_query, w_key, w_value, jnp.float32)
    assert out_f32.shape == (seq_len, d_out)
    assert jnp.allclose(out_f32, ref_f32, atol=2e-2, rtol=2e-2), \
        "f32 kernel mismatch vs module reference"

    # 2) Default bf16 MXU-operand path (larger default tiles, bf16 exp on v6e/v7x).
    out_bf16 = self_attention_v1(x, w_query, w_key, w_value)
    out_bf16 = jax.block_until_ready(out_bf16)
    ref_bf16 = _reference(x, w_query, w_key, w_value, jnp.bfloat16)
    assert out_bf16.shape == (seq_len, d_out)
    assert jnp.allclose(out_bf16, ref_bf16, atol=3e-2, rtol=3e-2), \
        "bf16 kernel mismatch vs bf16-matched reference"

    # 3) Ragged sequence length: exercises the padded / masked-tail path.
    seq2 = 100
    x2 = x[:seq2]
    out_ragged = self_attention_v1(x2, w_query, w_key, w_value,
                                   block_q=64, block_kv=64,
                                   compute_dtype=jnp.float32)
    out_ragged = jax.block_until_ready(out_ragged)
    ref_ragged = _reference(x2, w_query, w_key, w_value, jnp.float32)
    assert out_ragged.shape == (seq2, d_out)
    assert jnp.allclose(out_ragged, ref_ragged, atol=2e-2, rtol=2e-2), \
        "ragged-length kernel mismatch vs module reference"

    print("KERNEL_OK")
</pallas_src>

<mosaic_0001>
module attributes {stable_mosaic.version = 11 : i64} {
  func.func @_qkv_proj_kernel(%arg0: i32, %arg1: memref<64x32xf32, #tpu.memory_space<vmem>>, %arg2: memref<32x128xf32, #tpu.memory_space<vmem>>, %arg3: memref<32x128xf32, #tpu.memory_space<vmem>>, %arg4: memref<32x128xf32, #tpu.memory_space<vmem>>, %arg5: memref<64x128xf32, #tpu.memory_space<vmem>>, %arg6: memref<64x128xf32, #tpu.memory_space<vmem>>, %arg7: memref<64x128xf32, #tpu.memory_space<vmem>>) attributes {dimension_semantics = [#tpu.dimension_semantics<parallel>], iteration_bounds = array<i64: 2>, scalar_prefetch = 0 : i64, scratch_operands = 0 : i64, tpu.core_type = #tpu.core_type<tc>, window_params = [{transform_indices = @transform_0, window_bounds = array<i64: 64, 32>}, {pipeline_mode = #tpu.pipeline_mode<synchronous>, transform_indices = @transform_1, window_bounds = array<i64: 32, 128>}, {pipeline_mode = #tpu.pipeline_mode<synchronous>, transform_indices = @transform_2, window_bounds = array<i64: 32, 128>}, {pipeline_mode = #tpu.pipeline_mode<synchronous>, transform_indices = @transform_3, window_bounds = array<i64: 32, 128>}, {transform_indices = @transform_4, window_bounds = array<i64: 64, 128>}, {transform_indices = @transform_5, window_bounds = array<i64: 64, 128>}, {transform_indices = @transform_6, window_bounds = array<i64: 64, 128>}]} {
    %c0 = arith.constant 0 : index
    %c0_0 = arith.constant 0 : index
    %0 = vector.load %arg1[%c0, %c0_0] : memref<64x32xf32, #tpu.memory_space<vmem>>, vector<64x32xf32>
    %c0_1 = arith.constant 0 : index
    %c0_2 = arith.constant 0 : index
    %1 = vector.load %arg2[%c0_1, %c0_2] : memref<32x128xf32, #tpu.memory_space<vmem>>, vector<32x128xf32>
    %cst = arith.constant dense<0.000000e+00> : vector<64x128xf32>
    %2 = tpu.matmul %0, %1, %cst {dimension_numbers = #tpu.dot_dimension_numbers<[1], [0], [0], [1], [0, 0, 1, 1], [], []>} : vector<64x32xf32>, vector<32x128xf32>, vector<64x128xf32> -> vector<64x128xf32>
    %cst_3 = arith.constant 2.500000e-01 : f32
    %3 = vector.broadcast %cst_3 : f32 to vector<64x128xf32>
    %4 = arith.mulf %2, %3 : vector<64x128xf32>
    %c0_4 = arith.constant 0 : index
    %c0_5 = arith.constant 0 : index
    %5 = vector.load %arg5[%c0_4, %c0_5] : memref<64x128xf32, #tpu.memory_space<vmem>>, vector<64x128xf32>
    tpu.vector_store %arg5[%c0_4, %c0_5], %4 {strides = array<i32>} : memref<64x128xf32, #tpu.memory_space<vmem>>, vector<64x128xf32>,
    %c0_6 = arith.constant 0 : index
    %c0_7 = arith.constant 0 : index
    %6 = vector.load %arg3[%c0_6, %c0_7] : memref<32x128xf32, #tpu.memory_space<vmem>>, vector<32x128xf32>
    %cst_8 = arith.constant dense<0.000000e+00> : vector<64x128xf32>
    %7 = tpu.matmul %0, %6, %cst_8 {dimension_numbers = #tpu.dot_dimension_numbers<[1], [0], [0], [1], [0, 0, 1, 1], [], []>} : vector<64x32xf32>, vector<32x128xf32>, vector<64x128xf32> -> vector<64x128xf32>
    %c0_9 = arith.constant 0 : index
    %c0_10 = arith.constant 0 : index
    %8 = vector.load %arg6[%c0_9, %c0_10] : memref<64x128xf32, #tpu.memory_space<vmem>>, vector<64x128xf32>
    tpu.vector_store %arg6[%c0_9, %c0_10], %7 {strides = array<i32>} : memref<64x128xf32, #tpu.memory_space<vmem>>, vector<64x128xf32>,
    %c0_11 = arith.constant 0 : index
    %c0_12 = arith.constant 0 : index
    %9 = vector.load %arg4[%c0_11, %c0_12] : memref<32x128xf32, #tpu.memory_space<vmem>>, vector<32x128xf32>
    %cst_13 = arith.constant dense<0.000000e+00> : vector<64x128xf32>
    %10 = tpu.matmul %0, %9, %cst_13 {dimension_numbers = #tpu.dot_dimension_numbers<[1], [0], [0], [1], [0, 0, 1, 1], [], []>} : vector<64x32xf32>, vector<32x128xf32>, vector<64x128xf32> -> vector<64x128xf32>
    %c0_14 = arith.constant 0 : index
    %c0_15 = arith.constant 0 : index
    %11 = vector.load %arg7[%c0_14, %c0_15] : memref<64x128xf32, #tpu.memory_space<vmem>>, vector<64x128xf32>
    tpu.vector_store %arg7[%c0_14, %c0_15], %10 {strides = array<i32>} : memref<64x128xf32, #tpu.memory_space<vmem>>, vector<64x128xf32>,
    return
  }
  func.func @transform_0(%arg0: i32) -> (i32, i32) {
    %c0_i32 = arith.constant 0 : i32
    %c0_i32_0 = arith.constant 0 : i32
    return %arg0, %c0_i32 : i32, i32
  }
  func.func @transform_1(%arg0: i32) -> (i32, i32) {
    %c0_i32 = arith.constant 0 : i32
    %c0_i32_0 = arith.constant 0 : i32
    %c0_i32_1 = arith.constant 0 : i32
    return %c0_i32, %c0_i32_0 : i32, i32
  }
  func.func @transform_2(%arg0: i32) -> (i32, i32) {
    %c0_i32 = arith.constant 0 : i32
    %c0_i32_0 = arith.constant 0 : i32
    %c0_i32_1 = arith.constant 0 : i32
    return %c0_i32, %c0_i32_0 : i32, i32
  }
  func.func @transform_3(%arg0: i32) -> (i32, i32) {
    %c0_i32 = arith.constant 0 : i32
    %c0_i32_0 = arith.constant 0 : i32
    %c0_i32_1 = arith.constant 0 : i32
    return %c0_i32, %c0_i32_0 : i32, i32
  }
  func.func @transform_4(%arg0: i32) -> (i32, i32) {
    %c0_i32 = arith.constant 0 : i32
    %c0_i32_0 = arith.constant 0 : i32
    return %arg0, %c0_i32 : i32, i32
  }
  func.func @transform_5(%arg0: i32) -> (i32, i32) {
    %c0_i32 = arith.constant 0 : i32
    %c0_i32_0 = arith.constant 0 : i32
    return %arg0, %c0_i32 : i32, i32
  }
  func.func @transform_6(%arg0: i32) -> (i32, i32) {
    %c0_i32 = arith.constant 0 : i32
    %c0_i32_0 = arith.constant 0 : i32
    return %arg0, %c0_i32 : i32, i32
  }
}

</mosaic_0001>

<bundles_post_ra>
// kernel: tpu_custom_call.1
= control target key start
LH: loop header
LB: loop body
LE: loop exit
PB: predicated region body
PF: predicated region fallthrough
CT: control target
= control target key end

     0   :  { %12 = vsyncpa [#allocation3], 0  ;;  %s1473_s0 = inlined_call_operand.vmem [shape: f32[128,32], index: 0, kind: input, shape index: {}]   ;;  %s1474_s1 = inlined_call_operand.vmem [shape: f32[32,128], index: 1, kind: input, shape index: {}]   ;;  %s1475_s2 = inlined_call_operand.vmem [shape: f32[32,128], index: 2, kind: input, shape index: {}]   ;;  %s1476_s3 = inlined_call_operand.vmem [shape: f32[32,128], index: 3, kind: input, shape index: {}]   ;;  %s1477_s4 = inlined_call_operand.hbm [shape: f32[128,128], index: 4, kind: output, shape index: {0}]   ;;  %s1478_s5 = inlined_call_operand.hbm [shape: f32[128,128], index: 5, kind: output, shape index: {1}]   ;;  %s1479_s6 = inlined_call_operand.hbm [shape: f32[128,128], index: 6, kind: output, shape index: {2}]  }
   0x1   :  { %14 = vsyncpa [#allocation3 + $0x1], 0 }
   0x2   :  { %15 = vsyncpa [#allocation5], 0 }
   0x3   :  { %17 = vsyncpa [#allocation5 + $0x1], 0  ;;  %s1204_s21 = smov 0   ;;  %s1206_s22 = smov 0  }
   0x4   :  { %s1208_s23 = smov 0   ;;  %s1210_s24 = smov 0  }
   0x5 LB: > { %s1225_s25 = sadd.s32 4294967295, %s1162_s24   ;;  %s1480_s26 = sadd.s32 4294967294, %s1162_s24   ;;  %s1162_s24 = sphi %s1210_s24, %s1490_s24   ;;  %s1158_s23 = sphi %s1208_s23, %s1489_s23   ;;  %s1154_s22 = sphi %s1206_s22, %s1488_s22   ;;  %s1150_s21 = sphi %s1204_s21, %s1487_s21  }
   0x6   : > { %s1229_s27 = sadd.s32 1, %s1162_s24   ;;  %s119_s28 = sadd.s32 1, %s1158_s23 }
   0x7   : > { %s116_s29 = ssub.s32 %s1162_s24, %s1229_s27  ;;  %p129_p0 = scmp.ne.s32.totalorder %s1158_s23, %s1154_s22 }
   0x8   : > { %p117_p1 = scmp.eq.s32.totalorder %s116_s29, 0  ;;  %p130_p2 = scmp.eq.s32.totalorder %s1225_s25, 1 }
   0x9   : > { %p135_p3 = scmp.ne.s32.totalorder %s1154_s22, %s1150_s21  ;;  %p136_p4 = scmp.eq.s32.totalorder %s1480_s26, 1 }
   0xa   : > { %s1242_s30 = scalar_select %p117_p1, %s1158_s23, %s119_s28  }
   0xb   : > { %p1244_p5 = por %p130_p2, %p129_p0  ;;  %p1248_p6 = por %p136_p4, %p135_p3 }
   0xc   : > { %p847_p7 = scmp.ge.s32.totalorder %s1162_s24, 1  ;;  %p224_p8 = scmp.lt.s32.totalorder %s1162_s24, 3 }
   0xe   : > { %p225_p9 = pnand %p847_p7, %p224_p8 }
   0xf   : > { %s851_s13 = sshll.u32 (!%p225_p9), %s1225_s25, 3  ;;  %s247_s10 = sand.u32 (!%p225_p9), 1, %s1154_s22  }
  0x10   : > { %228 = sbr.rel (%p225_p9) target bundleno = 296 (0x128), region = 36  ;;  %p265_p10 = scmp.lt.s32.totalorder (!%p225_p9), %s851_s13, 15 }
  0x11   : > { %s1321_s11 = sshll.u32 (!%p225_p9), %s247_s10, 6  ;;  %s1164_s20 = smov (!%p225_p9), [#allocation2]  }
  0x12   : > { %s249_s12 = scalar_lea.vmem (!%p225_p9), [#allocation2], %s1321_s11 }
  0x13   : > { %s689_s14 = sshll.u32 (!%p225_p9), %s249_s12, 4  ;;  %s1333_s14 = int_to_ptr.vmem [resolvable:$true] %s689_s14 }
  0x14   : > { %s1046_s19 = scalar_lea.vmem (!%p225_p9), %s1333_s14, 1024 }
  0x15   : > { %v284_v0 = vld [vmem:[%s1474_s1 + $0x18] sm:$0xff]  ;;  %v283_v1 = vld [vmem:[%s1474_s1 + $0x10] sm:$0xff]  ;;  %v282_v2 = vld [vmem:[%s1474_s1 + $0x8] sm:$0xff]  ;;  %s1492_s13 = smov (!%p265_p10, %s851_s13), 15  ;;  %vm285_vm0 = vcmask 261120   ;;  %p1047_p11 = scmp.ne.s32.totalorder %s1333_s14, %s1046_s19 }
  0x16   : > { %927 = vmatprep.subr.mxu0 %v284_v0  ;;  %987 = vmatprep.subr.mxu1 %v284_v0  ;;  %v281_v3 = vld [vmem:[%s1474_s1] sm:$0xff]  ;;  %s852_s18 = sshll.u32 %s1492_s13, 3  ;;  %v434_v8 = vld [vmem:[%s1475_s2 + $0x18] sm:$0xff]  ;;  %v433_v10 = vld [vmem:[%s1475_s2 + $0x10] sm:$0xff]  ;;  %s1325_s13 = sshll.u32 %s1225_s25, 10 }
  0x17   : > { %928 = vmatpush3.msra.mxu0 %v284_v0  ;;  %991 = vmatpush3.msra.mxu1 %v284_v0  ;;  %s268_s28 = scalar_lea.vmem %s1473_s0, %s852_s18  ;;  %v551_v9 = vld [vmem:[%s1476_s3 + $0x18] sm:$0xff]  ;;  %v550_v11 = vld [vmem:[%s1476_s3 + $0x10] sm:$0xff]  ;;  %v432_v16 = vld [vmem:[%s1475_s2 + $0x8] sm:$0xff]  ;;  %s1331_s17 = scalar_lea.hbm %s1477_s4, %s1325_s13 }
  0x18   : > { %929 = vmatprep.subr.mxu0 %v283_v1  ;;  %988 = vmatprep.subr.mxu1 %v283_v1  ;;  %v273_v4 = vld [vmem:[%s268_s28] sm:$0xff]  ;;  %v274_v6 = vld [vmem:[%s268_s28 + $0x8] sm:$0xff]  ;;  %v275_v12 = vld [vmem:[%s268_s28 + $0x10] sm:$0xff]  ;;  %s1337_s18 = scalar_lea.sflag [#allocation3], %s247_s10  ;;  %p1048_p12 = pnand %p1047_p11, %p1244_p5 }
  0x19   : > { %930 = vmatpush3.msra.mxu0 %v283_v1  ;;  %992 = vmatpush3.msra.mxu1 %v283_v1  ;;  %v277_v5 = vld [vmem:[%s268_s28 + $0x20] sm:$0xff]  ;;  %v278_v7 = vld [vmem:[%s268_s28 + $0x28] sm:$0xff]  ;;  %v279_v13 = vld [vmem:[%s268_s28 + $0x30] sm:$0xff] }
  0x1a   : > { %931 = vmatprep.subr.mxu0 %v282_v2  ;;  %989 = vmatprep.subr.mxu1 %v282_v2  ;;  %v276_v14 = vld [vmem:[%s268_s28 + $0x18] sm:$0xff]  ;;  %v549_v17 = vld [vmem:[%s1476_s3 + $0x8] sm:$0xff]  ;;  %v431_v18 = vld [vmem:[%s1475_s2] sm:$0xff]  ;;  %p1049_p13 = pneg %p1048_p12 }
  0x1b   : > { %932 = vmatpush3.msra.mxu0 %v282_v2  ;;  %993 = vmatpush3.msra.mxu1 %v282_v2  ;;  %v280_v15 = vld [vmem:[%s268_s28 + $0x38] sm:$0xff]  ;;  %v548_v19 = vld [vmem:[%s1476_s3] sm:$0xff]  ;;  %s1050_s28 = sshll.u32 %s1164_s20, 4  ;;  %s1051_s28 = int_to_ptr.vmem [resolvable:$false] %s1050_s28 }
  0x1c   : > { %933 = vmatprep.subr.mxu0 %v281_v3  ;;  %990 = vmatprep.subr.mxu1 %v281_v3  ;;  %s1052_s29 = scalar_lea.vmem %s1051_s28, 2048  ;;  %p1053_p0 = scmp.lt.s32.totalorder %s1333_s14, %s1051_s28 }
  0x1d   : > { %934 = vmatpush3.msra.mxu0 %v281_v3  ;;  %994 = vmatpush3.msra.mxu1 %v281_v3  ;;  %p1054_p1 = scmp.lt.s32.totalorder %s1052_s29, %s1046_s19 }
  0x1e   : > { %935 = vmatprep.mubr.msk.f32.mxu0 %vm285_vm0, %v273_v4  ;;  %941 = vmatprep.mubr.msk.f32.mxu1 %vm285_vm0, %v277_v5 }
  0x1f   : > { %936 = vmatmul.mubr.msk.f32.vlgmr.msra.gmra.mxu0 %vm285_vm0, %v274_v6  ;;  %942 = vmatmul.mubr.msk.f32.vlgmr.msra.gmra.mxu1 %vm285_vm0, %v278_v7  ;;  %p1055_p2 = por %p1054_p1, %p1053_p0 }
  0x20   : > { %947 = vmatprep.subr.mxu1 %v434_v8  ;;  %967 = vmatprep.subr.mxu0 %v551_v9 }
  0x21   : > { %948 = vmatpush3.msra.mxu1 %v434_v8  ;;  %968 = vmatpush3.msra.mxu0 %v551_v9  ;;  %p1056_p3 = pnand %p1055_p2, %p1049_p13 }
  0x22   : > { %949 = vmatprep.subr.mxu1 %v433_v10  ;;  %969 = vmatprep.subr.mxu0 %v550_v11 }
  0x23   : > { %938 = vmatprep.mubr.msk.f32.mxu0 %vm285_vm0, %v275_v12  ;;  %944 = vmatprep.mubr.msk.f32.mxu1 %vm285_vm0, %v279_v13 }
  0x24   : > { %950 = vmatpush3.msra.mxu1 %v433_v10  ;;  %970 = vmatpush3.msra.mxu0 %v550_v11 }
  0x25   : > { %939 = vmatmul.mubr.msk.f32.gmra.mxu0 %vm285_vm0, %v276_v14  ;;  %945 = vmatmul.mubr.msk.f32.gmra.mxu1 %vm285_vm0, %v280_v15 }
  0x26   : > { %951 = vmatprep.subr.mxu1 %v432_v16  ;;  %971 = vmatprep.subr.mxu0 %v549_v17 }
  0x27   : > { %952 = vmatpush3.msra.mxu1 %v432_v16  ;;  %972 = vmatpush3.msra.mxu0 %v549_v17 }
  0x28   : > { %953 = vmatprep.subr.mxu1 %v431_v18  ;;  %973 = vmatprep.subr.mxu0 %v548_v19 }
  0x29   : > { %954 = vmatpush3.msra.mxu1 %v431_v18  ;;  %955 = vmatprep.mubr.msk.f32.mxu1 %vm285_vm0, %v273_v4 }
  0x2a   : > { %974 = vmatpush3.msra.mxu0 %v548_v19  ;;  %975 = vmatprep.mubr.msk.f32.mxu0 %vm285_vm0, %v273_v4 }
  0x2b   : > { %956 = vmatmul.mubr.msk.f32.vlgmr.msra.gmra.mxu1 %vm285_vm0, %v274_v6  ;;  %976 = vmatmul.mubr.msk.f32.vlgmr.msra.gmra.mxu0 %vm285_vm0, %v274_v6 }
  0x2c   : > { %958 = vmatprep.mubr.msk.f32.mxu1 %vm285_vm0, %v275_v12  ;;  %978 = vmatprep.mubr.msk.f32.mxu0 %vm285_vm0, %v275_v12 }
  0x2f   : > { %959 = vmatmul.mubr.msk.f32.gmra.mxu1 %vm285_vm0, %v276_v14  ;;  %979 = vmatmul.mubr.msk.f32.gmra.mxu0 %vm285_vm0, %v276_v14 }
  0x30   : > { %961 = vmatprep.mubr.msk.f32.mxu1 %vm285_vm0, %v277_v5  ;;  %981 = vmatprep.mubr.msk.f32.mxu0 %vm285_vm0, %v277_v5 }
  0x33   : > { %962 = vmatmul.mubr.msk.f32.gmra.mxu1 %vm285_vm0, %v278_v7  ;;  %982 = vmatmul.mubr.msk.f32.gmra.mxu0 %vm285_vm0, %v278_v7 }
  0x34   : > { %964 = vmatprep.mubr.msk.f32.mxu1 %vm285_vm0, %v279_v13  ;;  %984 = vmatprep.mubr.msk.f32.mxu0 %vm285_vm0, %v279_v13 }
  0x37   : > { %965 = vmatmul.mubr.msk.f32.gmra.mxu1 %vm285_vm0, %v280_v15  ;;  %985 = vmatmul.mubr.msk.f32.gmra.mxu0 %vm285_vm0, %v280_v15 }
  0xdf   : > { %v937_v20 = vpop.f32.mrf.mxu0  ;;  %v943_v21 = vpop.f32.mrf.mxu1 }
  0xe0   : > { %v416_v22 = vmul.f32 0.25, %v937_v20  ;;  %v420_v23 = vmul.f32 0.25, %v943_v21 }
  0xe1   : > { %v376_v24 = vpop.f32.mrf.mxu0  ;;  %v396_v25 = vpop.f32.mrf.mxu1 }
  0xe2   : > { %424 = vst [vmem:[%s249_s12 + $0x8] sm:$0xff] %v416_v22  ;;  %428 = vst [vmem:[%s249_s12 + $0x28] sm:$0xff] %v420_v23  ;;  %v415_v26 = vmul.f32 0.25, %v376_v24  ;;  %v419_v27 = vmul.f32 0.25, %v396_v25 }
  0xe4   : > { %423 = vst [vmem:[%s249_s12] sm:$0xff] %v415_v26  ;;  %427 = vst [vmem:[%s249_s12 + $0x20] sm:$0xff] %v419_v27 }
  0xe5   : > { %v940_v28 = vpop.f32.mrf.mxu0  ;;  %v946_v29 = vpop.f32.mrf.mxu1 }
  0xe6   : > { %v418_v30 = vmul.f32 0.25, %v940_v28  ;;  %v422_v31 = vmul.f32 0.25, %v946_v29 }
  0xe7   : > { %v386_v32 = vpop.f32.mrf.mxu0  ;;  %v406_v33 = vpop.f32.mrf.mxu1 }
  0xe8   : > { %426 = vst [vmem:[%s249_s12 + $0x18] sm:$0xff] %v418_v30  ;;  %430 = vst [vmem:[%s249_s12 + $0x38] sm:$0xff] %v422_v31  ;;  %v417_v34 = vmul.f32 0.25, %v386_v32  ;;  %v421_v35 = vmul.f32 0.25, %v406_v33 }
  0xea   : > { %425 = vst [vmem:[%s249_s12 + $0x10] sm:$0xff] %v417_v34  ;;  %429 = vst [vmem:[%s249_s12 + $0x30] sm:$0xff] %v421_v35 }
  0xeb   : > { %v957_v36 = vpop.f32.mrf.mxu1  ;;  %v977_v37 = vpop.f32.mrf.mxu0 }
  0xec   : > { %1059 = shalt.err (!%p1056_p3)
}
  0xed   : > { %s1060_s9 = scalar_lea.hbm %s1331_s17, 1024  ;;  %s1064_s15 = scalar_lea.hbm %s1477_s4, 2048 }
  0xee   : > { %p1061_p4 = scmp.ne.s32.totalorder %s1331_s17, %s1060_s9  ;;  %p1065_p9 = scmp.lt.s32.totalorder %s1331_s17, %s1477_s4 }
  0xef   : > { %p1066_p10 = scmp.lt.s32.totalorder %s1064_s15, %s1060_s9 }
  0xf0   : > { %p1062_p7 = pnand %p1061_p4, %p1244_p5 }
  0xf1   : > { %p1067_p11 = por %p1066_p10, %p1065_p9 }
  0xf2   : > { %p1063_p8 = pneg %p1062_p7 }
  0xf4   : > { %p1068_p12 = pnand %p1067_p11, %p1063_p8 }
  0xf6   : > { %1071 = shalt.err (!%p1068_p12)
}
  0xf7   : > { %s1481_s19 = smov 128   ;;  %s1166_s28 = smov 8   ;;  %v501_v38 = vpop.f32.mrf.mxu1  ;;  %v618_v39 = vpop.f32.mrf.mxu0 }
  0xf8   : > { %995 = dma.vmem_to_hbm [thread:$0]  (%p1244_p5), %s1333_s14, 1024, %s1331_s17, %s1337_s18, %s1481_s19, %s1481_s19, %s1166_s28  }
  0xf9   : > { %s1364_s29 = scalar_lea.vmem [#allocation4], %s1321_s11  ;;  %s1368_s9 = scalar_lea.vmem [#allocation6], %s1321_s11  ;;  %v960_v40 = vpop.f32.mrf.mxu1  ;;  %v980_v41 = vpop.f32.mrf.mxu0 }
  0xfa   : > { %541 = vst [vmem:[%s1364_s29 + $0x8] sm:$0xff] %v957_v36  ;;  %658 = vst [vmem:[%s1368_s9 + $0x8] sm:$0xff] %v977_v37  ;;  %s705_s11 = sshll.u32 %s1364_s29, 4  ;;  %s670_s14 = sand.u32 1, %s1225_s25   ;;  %s1384_s11 = int_to_ptr.vmem [resolvable:$true] %s705_s11 }
  0xfb   : > { %540 = vst [vmem:[%s1364_s29] sm:$0xff] %v501_v38  ;;  %657 = vst [vmem:[%s1368_s9] sm:$0xff] %v618_v39  ;;  %v511_v42 = vpop.f32.mrf.mxu1  ;;  %v628_v43 = vpop.f32.mrf.mxu0  ;;  %s721_s17 = sshll.u32 %s1368_s9, 4  ;;  %s1392_s12 = scalar_lea.hbm %s1478_s5, %s1325_s13  ;;  %s1394_s17 = int_to_ptr.vmem [resolvable:$true] %s721_s17 }
  0xfc   : > { %543 = vst [vmem:[%s1364_s29 + $0x18] sm:$0xff] %v960_v40  ;;  %660 = vst [vmem:[%s1368_s9 + $0x18] sm:$0xff] %v980_v41  ;;  %s1400_s16 = scalar_lea.hbm %s1479_s6, %s1325_s13  ;;  %s1404_s20 = scalar_lea.sflag [#allocation5], %s670_s14 }
  0xfd   : > { %542 = vst [vmem:[%s1364_s29 + $0x10] sm:$0xff] %v511_v42  ;;  %659 = vst [vmem:[%s1368_s9 + $0x10] sm:$0xff] %v628_v43  ;;  %v963_v44 = vpop.f32.mrf.mxu1  ;;  %v983_v45 = vpop.f32.mrf.mxu0  ;;  %s1072_s26 = scalar_lea.vmem %s1384_s11, 1024  ;;  %s1167_s18 = smov [#allocation4]  }
  0xfe   : > { %545 = vst [vmem:[%s1364_s29 + $0x28] sm:$0xff] %v963_v44  ;;  %662 = vst [vmem:[%s1368_s9 + $0x28] sm:$0xff] %v983_v45  ;;  %p1073_p13 = scmp.ne.s32.totalorder %s1384_s11, %s1072_s26  ;;  %s1076_s10 = sshll.u32 %s1167_s18, 4  ;;  %s1077_s10 = int_to_ptr.vmem [resolvable:$false] %s1076_s10 }
  0xff   : > { %v521_v46 = vpop.f32.mrf.mxu1  ;;  %v638_v47 = vpop.f32.mrf.mxu0  ;;  %s1078_s19 = scalar_lea.vmem %s1077_s10, 2048  ;;  %p1079_p2 = scmp.lt.s32.totalorder %s1384_s11, %s1077_s10 }
 0x100   : > { %544 = vst [vmem:[%s1364_s29 + $0x20] sm:$0xff] %v521_v46  ;;  %661 = vst [vmem:[%s1368_s9 + $0x20] sm:$0xff] %v638_v47  ;;  %p1074_p0 = pnand %p1073_p13, %p1244_p5  ;;  %p1080_p3 = scmp.lt.s32.totalorder %s1078_s19, %s1072_s26 }
 0x101   : > { %v966_v48 = vpop.f32.mrf.mxu1  ;;  %v986_v49 = vpop.f32.mrf.mxu0 }
 0x102   : > { %547 = vst [vmem:[%s1364_s29 + $0x38] sm:$0xff] %v966_v48  ;;  %664 = vst [vmem:[%s1368_s9 + $0x38] sm:$0xff] %v986_v49  ;;  %p1075_p1 = pneg %p1074_p0  ;;  %p1081_p4 = por %p1080_p3, %p1079_p2 }
 0x103   : > { %v531_v50 = vpop.f32.mrf.mxu1  ;;  %v648_v51 = vpop.f32.mrf.mxu0 }
 0x104   : > { %546 = vst [vmem:[%s1364_s29 + $0x30] sm:$0xff] %v531_v50  ;;  %663 = vst [vmem:[%s1368_s9 + $0x30] sm:$0xff] %v648_v51  ;;  %p1082_p7 = pnand %p1081_p4, %p1075_p1 }
 0x106   : > { %1085 = shalt.err (!%p1082_p7)
}
 0x107   : > { %s1086_s13 = scalar_lea.hbm %s1392_s12, 1024  ;;  %s1090_s14 = scalar_lea.hbm %s1478_s5, 2048 }
 0x108   : > { %p1087_p8 = scmp.ne.s32.totalorder %s1392_s12, %s1086_s13  ;;  %p1091_p11 = scmp.lt.s32.totalorder %s1392_s12, %s1478_s5 }
 0x109   : > { %p1092_p12 = scmp.lt.s32.totalorder %s1090_s14, %s1086_s13 }
 0x10a   : > { %p1088_p9 = pnand %p1087_p8, %p1244_p5 }
 0x10b   : > { %p1093_p13 = por %p1092_p12, %p1091_p11 }
 0x10c   : > { %p1089_p10 = pneg %p1088_p9 }
 0x10e   : > { %p1094_p0 = pnand %p1093_p13, %p1089_p10 }
 0x110   : > { %1097 = shalt.err (!%p1094_p0)
}
 0x111   : > { %s1485_s26 = smov 128   ;;  %s1098_s19 = scalar_lea.vmem %s1394_s17, 1024 }
 0x112   : > { %996 = dma.vmem_to_hbm [thread:$0]  (%p1244_p5), %s1384_s11, 1024, %s1392_s12, %s1404_s20, %s1485_s26, %s1485_s26, %s1166_s28  }
 0x113   : > { %p1099_p1 = scmp.ne.s32.totalorder %s1394_s17, %s1098_s19  ;;  %s1168_s18 = smov [#allocation6]  }
 0x114   : > { %s1102_s10 = sshll.u32 %s1168_s18, 4  ;;  %s1103_s10 = int_to_ptr.vmem [resolvable:$false] %s1102_s10 }
 0x115   : > { %p1100_p2 = pnand %p1099_p1, %p1244_p5  ;;  %s1104_s13 = scalar_lea.vmem %s1103_s10, 2048 }
 0x116   : > { %p1105_p4 = scmp.lt.s32.totalorder %s1394_s17, %s1103_s10  ;;  %p1106_p7 = scmp.lt.s32.totalorder %s1104_s13, %s1098_s19 }
 0x117   : > { %p1101_p3 = pneg %p1100_p2 }
 0x118   : > { %p1107_p8 = por %p1106_p7, %p1105_p4 }
 0x11a   : > { %p1108_p9 = pnand %p1107_p8, %p1101_p3 }
 0x11c   : > { %1111 = shalt.err (!%p1108_p9)
}
 0x11d   : > { %s1112_s29 = scalar_lea.hbm %s1400_s16, 1024  ;;  %s1116_s9 = scalar_lea.hbm %s1479_s6, 2048 }
 0x11e   : > { %p1113_p10 = scmp.ne.s32.totalorder %s1400_s16, %s1112_s29  ;;  %p1117_p13 = scmp.lt.s32.totalorder %s1400_s16, %s1479_s6 }
 0x11f   : > { %p1118_p0 = scmp.lt.s32.totalorder %s1116_s9, %s1112_s29 }
 0x120   : > { %p1114_p11 = pnand %p1113_p10, %p1244_p5 }
 0x121   : > { %p1119_p1 = por %p1118_p0, %p1117_p13 }
 0x122   : > { %p1115_p12 = pneg %p1114_p11 }
 0x124   : > { %p1120_p2 = pnand %p1119_p1, %p1115_p12 }
 0x126   : > { %1123 = shalt.err (!%p1120_p2)
}
 0x127   : > { %997 = dma.vmem_to_hbm [thread:$0]  (%p1244_p5), %s1394_s17, 1024, %s1400_s16, %s1404_s20, %s1485_s26, %s1485_s26, %s1166_s28  }
 0x128 PF: > { %p1011_p3 = scmp.ge.s32.totalorder %s1162_s24, 2  ;;  %s736_s15 = sand.u32 1, %s1150_s21  }
 0x129   : > { %s737_s19 = scalar_lea.sflag [#allocation3], %s736_s15 }
 0x12a   : > { %p1002_p4 = pnand %p1011_p3, %p1248_p6 }
 0x12c   : > { %p1003_p7 = pneg %p1002_p4 }
 0x12e   : > { %1141 = dma.done.wait (%p1003_p7), %s737_s19, 1024  }
 0x12f   : > { %1143 = vsyncadd (%p1003_p7), %s737_s19, 4294966272  ;;  %s1486_s7 = sadd.s32 4294967294, %s1162_s24  }
 0x130   : > { %s745_s18 = sand.u32 1, %s1486_s7  }
 0x131   : > { %s746_s10 = scalar_lea.sflag [#allocation5], %s745_s18 }
 0x132   : > { %1145 = dma.done.wait (%p1003_p7), %s746_s10, 2048  }
 0x133   : > { %1147 = vsyncadd (%p1003_p7), %s746_s10, 4294965248  ;;  %p20_p5 = scmp.ge.s32.totalorder %s1229_s27, 4   ;;  %s1487_s21 = smov %s1154_s22 }
 0x134   : > { %s1488_s22 = smov %s1158_s23  ;;  %s1489_s23 = smov %s1242_s30 }
 0x135   : > { %s1490_s24 = smov %s1229_s27  ;;  %22 = sbr.rel (!%p20_p5) target bundleno = 5 (0x5), region = 103 }
 0x13a   :  { %760 = vsyncpa [#allocation3], 1 }
 0x13b   :  { %762 = vsyncpa [#allocation3 + $0x1], 1 }
 0x13c   :  { %763 = vsyncpa [#allocation5], 1 }
 0x13d   :  { %765 = vsyncpa [#allocation5 + $0x1], 1 }

</bundles_post_ra>
